<compile_context>
chip_gen: v5e
topology: v5e:2x2
jax: 0.10.0
libtpu: 0.0.40
codegen_flags: <defaults>
</compile_context>

<pallas_src>
import math

import numpy as np
import jax
import jax.numpy as jnp
from jax import lax
from jax.experimental import pallas as pl
from jax.experimental.pallas import tpu as pltpu


# ---------------------------------------------------------------------------
# Tunables.
# ---------------------------------------------------------------------------
_IDCT_ROW_TARGET = 2048          # ~1 MiB f32 input / 0.5 MiB bf16 output per buffer
_COLOR_COL_TARGET = 512          # image-column tile target for the color kernel
_COLOR_ROW_TARGET = 512          # image-row tile target for the color kernel
_INTER_DTYPE = jnp.bfloat16      # dtype of all intermediate planes (HBM traffic)


def _largest_divisor(n, multiple, cap):
    """Largest d with d | n, d % multiple == 0 and d <= cap; None if none."""
    best = None
    d = multiple
    hi = min(cap, n)
    while d <= hi:
        if n % d == 0:
            best = d
        d += multiple
    return best


def _vmem_limit(nbytes):
    return int(min(max(nbytes + (8 << 20), 32 << 20), 64 << 20))


# ---------------------------------------------------------------------------
# IDCT basis (identical to what idct_8x8.__init__ builds, alpha & 0.25 folded).
# ---------------------------------------------------------------------------
def _idct_basis_64():
    alpha = np.array([1.0 / np.sqrt(2)] + [1.0] * 7, dtype=np.float64)
    a2 = np.outer(alpha, alpha)
    x = np.arange(8)
    u = np.arange(8)
    cosm = np.cos((2 * u[None, :] + 1) * x[:, None] * np.pi / 16)   # [x, u]
    t = np.einsum("xu,yv->xyuv", cosm, cosm)                        # [x, y, u, v]
    # out[u,v] = 0.25 * sum_{x,y} in[x,y] * alpha2[x,y] * t[x,y,u,v]  (+128 in kernel)
    w = 0.25 * a2[:, :, None, None] * t
    return w.reshape(64, 64).astype(np.float32)


_W64 = _idct_basis_64()


# ---------------------------------------------------------------------------
# IDCT kernel: for each plane, (TM, lanes) @ (lanes, lanes) + 128, store bf16.
# ---------------------------------------------------------------------------
def _make_idct_kernel(n_planes):
    def kernel(*refs):
        in_refs = refs[:n_planes]
        w = refs[n_planes][...]
        out_refs = refs[n_planes + 1:]
        for i in range(n_planes):
            acc = jnp.dot(in_refs[i][...].astype(jnp.float32), w,
                          precision=lax.Precision.HIGHEST,
                          preferred_element_type=jnp.float32)
            out_refs[i][...] = (acc + 128.0).astype(out_refs[i].dtype)
    return kernel


def _idct_planes(planes):
    """planes: list of same-shape (B, n, 8, 8) coefficient arrays.

    Returns list of (B, n, 8, 8) bf16 spatial blocks (level shift applied).
    """
    shape = planes[0].shape
    for p in planes:
        assert p.shape == shape, "planes passed to one IDCT call must match"
    B, n = shape[0], shape[1]
    total = B * n

    # Pack 2 blocks per row (128 lanes) when possible; fall back to 1 (64 lanes).
    pack = 2 if total % 2 == 0 else 1
    lanes = 64 * pack
    M = total // pack

    # Row tile: a divisor of M (no XLA pad / slice), multiple of 8, as large as
    # possible up to the target, >=2 grid steps when M is big (megacore).
    pad = 0
    if M <= 64:
        tm = M
    else:
        cap = min(_IDCT_ROW_TARGET, M // 2)
        tm = _largest_divisor(M, 8, cap)
        if tm is None:
            if M * lanes * 4 <= (8 << 20):
                tm = M                                 # one big block, still cheap
            else:
                # TODO(synk): pathological row count with no usable divisor --
                # accept one XLA pad copy (rare; typical JPEG shapes never hit it).
                tm = _IDCT_ROW_TARGET
                pad = (-M) % tm

    xs = [p.reshape(M, lanes) for p in planes]         # contiguous -> free reshape
    if pad:
        xs = [jnp.pad(x, ((0, pad), (0, 0))) for x in xs]
    Mp = M + pad
    grid = (Mp // tm,)

    w = jnp.asarray(np.kron(np.eye(pack, dtype=np.float32), _W64))

    in_specs = [pl.BlockSpec((tm, lanes), lambda i: (i, 0)) for _ in planes]
    in_specs.append(pl.BlockSpec((lanes, lanes), lambda i: (0, 0)))
    out_specs = [pl.BlockSpec((tm, lanes), lambda i: (i, 0)) for _ in planes]
    out_shape = [jax.ShapeDtypeStruct((Mp, lanes), _INTER_DTYPE) for _ in planes]

    block_bytes = 2 * len(planes) * tm * lanes * (4 + 2) + lanes * lanes * 4
    outs = pl.pallas_call(
        _make_idct_kernel(len(planes)),
        out_shape=out_shape,
        grid=grid,
        in_specs=in_specs,
        out_specs=out_specs,
        compiler_params=pltpu.CompilerParams(
            dimension_semantics=("parallel",),
            vmem_limit_bytes=_vmem_limit(block_bytes)),
    )(*xs, w)

    results = []
    for o in outs:
        if pad:
            o = o[:M]
        results.append(o.reshape(B, n, 8, 8))
    return results


# ---------------------------------------------------------------------------
# block_merging: pure layout op (bf16 -> half the traffic of the f32 version).
# TODO(synk): the 8-pixel interleave of block_merging is left as a single XLA
# transpose; its (ub,r,c)->(r,ub,c) scatter is not a rectangular BlockSpec
# window and an in-kernel 8-lane-granular relayout is slow/fragile in Mosaic.
# ---------------------------------------------------------------------------
def _block_merge(patches, h, w):
    b = patches.shape[0]
    x = patches.reshape(b, h // 8, w // 8, 8, 8)
    x = jnp.transpose(x, (0, 1, 3, 2, 4))
    return x.reshape(b, h, w)


# ---------------------------------------------------------------------------
# Color kernel: fused 2x chroma upsample + YCbCr->RGB + clamp + /255, NCHW out.
# ---------------------------------------------------------------------------
def _color_kernel(y_ref, cb_ref, cr_ref, urow_ref, ucol_ref, out_ref):
    y = y_ref[0].astype(jnp.float32)      # (TR, TW)
    urow = urow_ref[...]                  # bf16 (TR, TR//2)   0/1 row duplication
    ucol = ucol_ref[...]                  # bf16 (TW//2, TW)   0/1 col duplication

    def up2x(half_ref):                   # bf16 (TR//2, TW//2) -> f32 (TR, TW)
        cols = jnp.dot(half_ref[0], ucol, preferred_element_type=jnp.float32)
        return jnp.dot(urow, cols.astype(jnp.bfloat16),
                       preferred_element_type=jnp.float32)

    cb = up2x(cb_ref) - 128.0             # shift = [0, -128, -128]
    cr = up2x(cr_ref) - 128.0
    # matrix = [[1, 0, 1.402], [1, -0.344136, -0.714136], [1, 1.772, 0]]
    r = y + 1.402 * cr
    g = y - 0.344136 * cb - 0.714136 * cr
    b = y + 1.772 * cb

    inv255 = jnp.float32(1.0 / 255.0)

    def finish(v):
        return (jnp.clip(v, 0.0, 255.0) * inv255).astype(out_ref.dtype)

    out_ref[0, 0] = finish(r)
    out_ref[0, 1] = finish(g)
    out_ref[0, 2] = finish(b)


def _pick_color_tiles(h, w):
    """Row/col tiles dividing (h, w); col tile multiple of 256 (or full width)
    so the half-res chroma block keeps a 128-lane-aligned last dim."""
    if w <= _COLOR_COL_TARGET:
        tw = w
    else:
        tw = _largest_divisor(w, 256, _COLOR_COL_TARGET) or w
    # Budget rows so double-buffered blocks stay well inside v7x's 64 MiB VMEM.
    row_cap = max(16, min(_COLOR_ROW_TARGET, ((20 << 20) // (32 * tw)) // 16 * 16))
    tr = h if h <= row_cap else _largest_divisor(h, 16, row_cap)
    return tr, tw


def _color_convert(y_img, cb_img, cr_img, out_dtype=jnp.float32):
    """y: (B,H,W), cb/cr: (B,H/2,W/2) bf16 -> (B,3,H,W) in [0,1] (NCHW)."""
    B, H, W = y_img.shape
    assert H % 16 == 0 and W % 16 == 0, "4:2:0 JPEG implies H, W multiples of 16"
    tr, tw = _pick_color_tiles(H, W)
    trc, twc = tr // 2, tw // 2

    # Per-tile duplication constants (identical for every tile -> tiny, not W^2).
    urow = jnp.asarray(
        (np.arange(tr)[:, None] // 2 == np.arange(trc)[None, :]).astype(np.float32),
        dtype=jnp.bfloat16)
    ucol = jnp.asarray(
        (np.arange(tw)[None, :] // 2 == np.arange(twc)[:, None]).astype(np.float32),
        dtype=jnp.bfloat16)

    osize = jnp.dtype(out_dtype).itemsize
    block_bytes = 2 * (tr * tw * 2 + 2 * trc * twc * 2 + 3 * tr * tw * osize) \
        + tr * trc * 2 + twc * tw * 2

    return pl.pallas_call(
        _color_kernel,
        out_shape=jax.ShapeDtypeStruct((B, 3, H, W), out_dtype),
        grid=(B, H // tr, W // tw),
        in_specs=[
            pl.BlockSpec((1, tr, tw), lambda b, t, wi: (b, t, wi)),
            pl.BlockSpec((1, trc, twc), lambda b, t, wi: (b, t, wi)),
            pl.BlockSpec((1, trc, twc), lambda b, t, wi: (b, t, wi)),
            pl.BlockSpec((tr, trc), lambda b, t, wi: (0, 0)),
            pl.BlockSpec((twc, tw), lambda b, t, wi: (0, 0)),
        ],
        out_specs=pl.BlockSpec((1, 3, tr, tw), lambda b, t, wi: (b, 0, t, wi)),
        compiler_params=pltpu.CompilerParams(
            dimension_semantics=("parallel", "parallel", "parallel"),
            vmem_limit_bytes=_vmem_limit(block_bytes)),
    )(y_img, cb_img, cr_img, urow, ucol)


# ---------------------------------------------------------------------------
# Full forward pass.
# ---------------------------------------------------------------------------
def decompress_jpeg_forward(y, cb, cr, height, width, out_dtype=jnp.float32):
    """y: (B, H*W/64, 8, 8); cb/cr: (B, (H/2)*(W/2)/64, 8, 8) -> (B, 3, H, W)."""
    (y_sp,) = _idct_planes([y])
    cb_sp, cr_sp = _idct_planes([cb, cr])      # Cb+Cr share one pallas_call

    y_img = _block_merge(y_sp, height, width)
    cb_img = _block_merge(cb_sp, height // 2, width // 2)
    cr_img = _block_merge(cr_sp, height // 2, width // 2)

    return _color_convert(y_img, cb_img, cr_img, out_dtype=out_dtype)


# ---------------------------------------------------------------------------
# Pure-numpy reference (mirrors the PyTorch semantics) for a sanity check.
# ---------------------------------------------------------------------------
def _reference_np(y, cb, cr, H, W):
    alpha = np.array([1.0 / np.sqrt(2)] + [1.0] * 7, dtype=np.float32)
    alpha2 = np.outer(alpha, alpha).astype(np.float32)
    t = np.zeros((8, 8, 8, 8), dtype=np.float32)
    for x in range(8):
        for yy in range(8):
            for u in range(8):
                for v in range(8):
                    t[x, yy, u, v] = (math.cos((2 * u + 1) * x * math.pi / 16) *
                                      math.cos((2 * v + 1) * yy * math.pi / 16))

    def idct(img):
        return 0.25 * np.tensordot(img * alpha2, t, axes=2) + 128.0

    def merge(p, h, w):
        b = p.shape[0]
        return p.reshape(b, h // 8, w // 8, 8, 8).transpose(0, 1, 3, 2, 4).reshape(b, h, w)

    y_i = merge(idct(y), H, W)
    cb_i = merge(idct(cb), H // 2, W // 2)
    cr_i = merge(idct(cr), H // 2, W // 2)
    cb_u = np.repeat(np.repeat(cb_i, 2, 1), 2, 2)
    cr_u = np.repeat(np.repeat(cr_i, 2, 1), 2, 2)
    img = np.stack([y_i, cb_u, cr_u], axis=-1)
    shift = np.array([0.0, -128.0, -128.0], dtype=np.float32)
    matrix = np.array([[1.0, 0.0, 1.402],
                       [1.0, -0.344136, -0.714136],
                       [1.0, 1.772, 0.0]], dtype=np.float32).T
    res = np.tensordot(img + shift, matrix, axes=1).transpose(0, 3, 1, 2)
    return np.minimum(255.0, np.maximum(0.0, res)) / 255.0


if __name__ == "__main__":
    B, H, W = 2, 16, 16
    ny = (H // 8) * (W // 8)            # 4
    nc = (H // 16) * (W // 16)          # 1

    key = jax.random.PRNGKey(0)
    ky, kcb, kcr = jax.random.split(key, 3)
    y = 20.0 * jax.random.normal(ky, (B, ny, 8, 8), dtype=jnp.float32)
    cb = 20.0 * jax.random.normal(kcb, (B, nc, 8, 8), dtype=jnp.float32)
    cr = 20.0 * jax.random.normal(kcr, (B, nc, 8, 8), dtype=jnp.float32)

    fwd = jax.jit(lambda a, b, c: decompress_jpeg_forward(a, b, c, H, W))
    out = jax.block_until_ready(fwd(y, cb, cr))

    assert out.shape == (B, 3, H, W), out.shape
    assert out.dtype == jnp.float32

    ref = _reference_np(np.asarray(y), np.asarray(cb), np.asarray(cr), H, W)
    np.testing.assert_allclose(np.asarray(out), ref, atol=2e-2, rtol=0)

    print("KERNEL_OK")
</pallas_src>

<mosaic_0001>
module attributes {stable_mosaic.version = 11 : i64} {
  func.func @kernel(%arg0: i32, %arg1: memref<1x128xf32, #tpu.memory_space<vmem>>, %arg2: memref<1x128xf32, #tpu.memory_space<vmem>>, %arg3: memref<128x128xf32, #tpu.memory_space<vmem>>, %arg4: memref<1x128xbf16, #tpu.memory_space<vmem>>, %arg5: memref<1x128xbf16, #tpu.memory_space<vmem>>) attributes {dimension_semantics = [#tpu.dimension_semantics<parallel>], iteration_bounds = array<i64: 1>, scalar_prefetch = 0 : i64, scratch_operands = 0 : i64, tpu.core_type = #tpu.core_type<tc>, window_params = [{transform_indices = @transform_0, window_bounds = array<i64: 1, 128>}, {transform_indices = @transform_1, window_bounds = array<i64: 1, 128>}, {pipeline_mode = #tpu.pipeline_mode<synchronous>, transform_indices = @transform_2, window_bounds = array<i64: 128, 128>}, {transform_indices = @transform_3, window_bounds = array<i64: 1, 128>}, {transform_indices = @transform_4, window_bounds = array<i64: 1, 128>}]} {
    %c0 = arith.constant 0 : index
    %c0_0 = arith.constant 0 : index
    %0 = vector.load %arg3[%c0, %c0_0] : memref<128x128xf32, #tpu.memory_space<vmem>>, vector<128x128xf32>
    %c0_1 = arith.constant 0 : index
    %c0_2 = arith.constant 0 : index
    %1 = vector.load %arg1[%c0_1, %c0_2] : memref<1x128xf32, #tpu.memory_space<vmem>>, vector<1x128xf32>
    %cst = arith.constant dense<0.000000e+00> : vector<1x128xf32>
    %2 = tpu.matmul %1, %0, %cst {dimension_numbers = #tpu.dot_dimension_numbers<[1], [0], [0], [1], [0, 0, 1, 1], [], []>, precision = #tpu.contract_precision<fp32>} : vector<1x128xf32>, vector<128x128xf32>, vector<1x128xf32> -> vector<1x128xf32>
    %cst_3 = arith.constant 1.280000e+02 : f32
    %3 = vector.broadcast %cst_3 : f32 to vector<1x128xf32>
    %4 = arith.addf %2, %3 : vector<1x128xf32>
    %5 = arith.truncf %4 : vector<1x128xf32> to vector<1x128xbf16>
    %c0_4 = arith.constant 0 : index
    %c0_5 = arith.constant 0 : index
    %6 = vector.load %arg4[%c0_4, %c0_5] : memref<1x128xbf16, #tpu.memory_space<vmem>>, vector<1x128xbf16>
    tpu.vector_store %arg4[%c0_4, %c0_5], %5 {strides = array<i32>} : memref<1x128xbf16, #tpu.memory_space<vmem>>, vector<1x128xbf16>,
    %c0_6 = arith.constant 0 : index
    %c0_7 = arith.constant 0 : index
    %7 = vector.load %arg2[%c0_6, %c0_7] : memref<1x128xf32, #tpu.memory_space<vmem>>, vector<1x128xf32>
    %cst_8 = arith.constant dense<0.000000e+00> : vector<1x128xf32>
    %8 = tpu.matmul %7, %0, %cst_8 {dimension_numbers = #tpu.dot_dimension_numbers<[1], [0], [0], [1], [0, 0, 1, 1], [], []>, precision = #tpu.contract_precision<fp32>} : vector<1x128xf32>, vector<128x128xf32>, vector<1x128xf32> -> vector<1x128xf32>
    %cst_9 = arith.constant 1.280000e+02 : f32
    %9 = vector.broadcast %cst_9 : f32 to vector<1x128xf32>
    %10 = arith.addf %8, %9 : vector<1x128xf32>
    %11 = arith.truncf %10 : vector<1x128xf32> to vector<1x128xbf16>
    %c0_10 = arith.constant 0 : index
    %c0_11 = arith.constant 0 : index
    %12 = vector.load %arg5[%c0_10, %c0_11] : memref<1x128xbf16, #tpu.memory_space<vmem>>, vector<1x128xbf16>
    tpu.vector_store %arg5[%c0_10, %c0_11], %11 {strides = array<i32>} : memref<1x128xbf16, #tpu.memory_space<vmem>>, vector<1x128xbf16>,
    return
  }
  func.func @transform_0(%arg0: i32) -> (i32, i32) {
    %c0_i32 = arith.constant 0 : i32
    %c0_i32_0 = arith.constant 0 : i32
    return %arg0, %c0_i32 : i32, i32
  }
  func.func @transform_1(%arg0: i32) -> (i32, i32) {
    %c0_i32 = arith.constant 0 : i32
    %c0_i32_0 = arith.constant 0 : i32
    return %arg0, %c0_i32 : i32, i32
  }
  func.func @transform_2(%arg0: i32) -> (i32, i32) {
    %c0_i32 = arith.constant 0 : i32
    %c0_i32_0 = arith.constant 0 : i32
    %c0_i32_1 = arith.constant 0 : i32
    return %c0_i32, %c0_i32_0 : i32, i32
  }
  func.func @transform_3(%arg0: i32) -> (i32, i32) {
    %c0_i32 = arith.constant 0 : i32
    %c0_i32_0 = arith.constant 0 : i32
    return %arg0, %c0_i32 : i32, i32
  }
  func.func @transform_4(%arg0: i32) -> (i32, i32) {
    %c0_i32 = arith.constant 0 : i32
    %c0_i32_0 = arith.constant 0 : i32
    return %arg0, %c0_i32 : i32, i32
  }
}

module attributes {stable_mosaic.version = 11 : i64} {
  func.func @kernel(%arg0: i32, %arg1: memref<4x128xf32, #tpu.memory_space<vmem>>, %arg2: memref<128x128xf32, #tpu.memory_space<vmem>>, %arg3: memref<4x128xbf16, #tpu.memory_space<vmem>>) attributes {dimension_semantics = [#tpu.dimension_semantics<parallel>], iteration_bounds = array<i64: 1>, scalar_prefetch = 0 : i64, scratch_operands = 0 : i64, tpu.core_type = #tpu.core_type<tc>, window_params = [{transform_indices = @transform_0, window_bounds = array<i64: 4, 128>}, {pipeline_mode = #tpu.pipeline_mode<synchronous>, transform_indices = @transform_1, window_bounds = array<i64: 128, 128>}, {transform_indices = @transform_2, window_bounds = array<i64: 4, 128>}]} {
    %c0 = arith.constant 0 : index
    %c0_0 = arith.constant 0 : index
    %0 = vector.load %arg2[%c0, %c0_0] : memref<128x128xf32, #tpu.memory_space<vmem>>, vector<128x128xf32>
    %c0_1 = arith.constant 0 : index
    %c0_2 = arith.constant 0 : index
    %1 = vector.load %arg1[%c0_1, %c0_2] : memref<4x128xf32, #tpu.memory_space<vmem>>, vector<4x128xf32>
    %cst = arith.constant dense<0.000000e+00> : vector<4x128xf32>
    %2 = tpu.matmul %1, %0, %cst {dimension_numbers = #tpu.dot_dimension_numbers<[1], [0], [0], [1], [0, 0, 1, 1], [], []>, precision = #tpu.contract_precision<fp32>} : vector<4x128xf32>, vector<128x128xf32>, vector<4x128xf32> -> vector<4x128xf32>
    %cst_3 = arith.constant 1.280000e+02 : f32
    %3 = vector.broadcast %cst_3 : f32 to vector<4x128xf32>
    %4 = arith.addf %2, %3 : vector<4x128xf32>
    %5 = arith.truncf %4 : vector<4x128xf32> to vector<4x128xbf16>
    %c0_4 = arith.constant 0 : index
    %c0_5 = arith.constant 0 : index
    %6 = vector.load %arg3[%c0_4, %c0_5] : memref<4x128xbf16, #tpu.memory_space<vmem>>, vector<4x128xbf16>
    tpu.vector_store %arg3[%c0_4, %c0_5], %5 {strides = array<i32>} : memref<4x128xbf16, #tpu.memory_space<vmem>>, vector<4x128xbf16>,
    return
  }
  func.func @transform_0(%arg0: i32) -> (i32, i32) {
    %c0_i32 = arith.constant 0 : i32
    %c0_i32_0 = arith.constant 0 : i32
    return %arg0, %c0_i32 : i32, i32
  }
  func.func @transform_1(%arg0: i32) -> (i32, i32) {
    %c0_i32 = arith.constant 0 : i32
    %c0_i32_0 = arith.constant 0 : i32
    %c0_i32_1 = arith.constant 0 : i32
    return %c0_i32, %c0_i32_0 : i32, i32
  }
  func.func @transform_2(%arg0: i32) -> (i32, i32) {
    %c0_i32 = arith.constant 0 : i32
    %c0_i32_0 = arith.constant 0 : i32
    return %arg0, %c0_i32 : i32, i32
  }
}

module attributes {stable_mosaic.version = 11 : i64} {
  func.func @_color_kernel(%arg0: i32, %arg1: i32, %arg2: i32, %arg3: memref<1x16x16xbf16, #tpu.memory_space<vmem>>, %arg4: memref<1x8x8xbf16, #tpu.memory_space<vmem>>, %arg5: memref<1x8x8xbf16, #tpu.memory_space<vmem>>, %arg6: memref<16x8xbf16, #tpu.memory_space<vmem>>, %arg7: memref<8x16xbf16, #tpu.memory_space<vmem>>, %arg8: memref<1x3x16x16xf32, #tpu.memory_space<vmem>>) attributes {dimension_semantics = [#tpu.dimension_semantics<parallel>, #tpu.dimension_semantics<parallel>, #tpu.dimension_semantics<parallel>], iteration_bounds = array<i64: 2, 1, 1>, scalar_prefetch = 0 : i64, scratch_operands = 0 : i64, tpu.core_type = #tpu.core_type<tc>, window_params = [{transform_indices = @transform_0, window_bounds = array<i64: 1, 16, 16>}, {transform_indices = @transform_1, window_bounds = array<i64: 1, 8, 8>}, {transform_indices = @transform_2, window_bounds = array<i64: 1, 8, 8>}, {pipeline_mode = #tpu.pipeline_mode<synchronous>, transform_indices = @transform_3, window_bounds = array<i64: 16, 8>}, {pipeline_mode = #tpu.pipeline_mode<synchronous>, transform_indices = @transform_4, window_bounds = array<i64: 8, 16>}, {transform_indices = @transform_5, window_bounds = array<i64: 1, 3, 16, 16>}]} {
    %c0 = arith.constant 0 : index
    %c0_0 = arith.constant 0 : index
    %c0_1 = arith.constant 0 : index
    %0 = vector.load %arg3[%c0, %c0_0, %c0_1] : memref<1x16x16xbf16, #tpu.memory_space<vmem>>, vector<1x16x16xbf16>
    %1 = vector.shape_cast %0 : vector<1x16x16xbf16> to vector<16x16xbf16>
    %2 = arith.extf %1 : vector<16x16xbf16> to vector<16x16xf32>
    %c0_2 = arith.constant 0 : index
    %c0_3 = arith.constant 0 : index
    %3 = vector.load %arg6[%c0_2, %c0_3] : memref<16x8xbf16, #tpu.memory_space<vmem>>, vector<16x8xbf16>
    %c0_4 = arith.constant 0 : index
    %c0_5 = arith.constant 0 : index
    %4 = vector.load %arg7[%c0_4, %c0_5] : memref<8x16xbf16, #tpu.memory_space<vmem>>, vector<8x16xbf16>
    %c0_6 = arith.constant 0 : index
    %c0_7 = arith.constant 0 : index
    %c0_8 = arith.constant 0 : index
    %5 = vector.load %arg4[%c0_6, %c0_7, %c0_8] : memref<1x8x8xbf16, #tpu.memory_space<vmem>>, vector<1x8x8xbf16>
    %6 = vector.shape_cast %5 : vector<1x8x8xbf16> to vector<8x8xbf16>
    %cst = arith.constant dense<0.000000e+00> : vector<8x16xf32>
    %7 = tpu.matmul %6, %4, %cst {dimension_numbers = #tpu.dot_dimension_numbers<[1], [0], [0], [1], [0, 0, 1, 1], [], []>} : vector<8x8xbf16>, vector<8x16xbf16>, vector<8x16xf32> -> vector<8x16xf32>
    %8 = arith.truncf %7 : vector<8x16xf32> to vector<8x16xbf16>
    %cst_9 = arith.constant dense<0.000000e+00> : vector<16x16xf32>
    %9 = tpu.matmul %3, %8, %cst_9 {dimension_numbers = #tpu.dot_dimension_numbers<[1], [0], [0], [1], [0, 0, 1, 1], [], []>} : vector<16x8xbf16>, vector<8x16xbf16>, vector<16x16xf32> -> vector<16x16xf32>
    %cst_10 = arith.constant 1.280000e+02 : f32
    %10 = vector.broadcast %cst_10 : f32 to vector<16x16xf32>
    %11 = arith.subf %9, %10 : vector<16x16xf32>
    %c0_11 = arith.constant 0 : index
    %c0_12 = arith.constant 0 : index
    %c0_13 = arith.constant 0 : index
    %12 = vector.load %arg5[%c0_11, %c0_12, %c0_13] : memref<1x8x8xbf16, #tpu.memory_space<vmem>>, vector<1x8x8xbf16>
    %13 = vector.shape_cast %12 : vector<1x8x8xbf16> to vector<8x8xbf16>
    %cst_14 = arith.constant dense<0.000000e+00> : vector<8x16xf32>
    %14 = tpu.matmul %13, %4, %cst_14 {dimension_numbers = #tpu.dot_dimension_numbers<[1], [0], [0], [1], [0, 0, 1, 1], [], []>} : vector<8x8xbf16>, vector<8x16xbf16>, vector<8x16xf32> -> vector<8x16xf32>
    %15 = arith.truncf %14 : vector<8x16xf32> to vector<8x16xbf16>
    %cst_15 = arith.constant dense<0.000000e+00> : vector<16x16xf32>
    %16 = tpu.matmul %3, %15, %cst_15 {dimension_numbers = #tpu.dot_dimension_numbers<[1], [0], [0], [1], [0, 0, 1, 1], [], []>} : vector<16x8xbf16>, vector<8x16xbf16>, vector<16x16xf32> -> vector<16x16xf32>
    %cst_16 = arith.constant 1.280000e+02 : f32
    %17 = vector.broadcast %cst_16 : f32 to vector<16x16xf32>
    %18 = arith.subf %16, %17 : vector<16x16xf32>
    %cst_17 = arith.constant 1.402000e+00 : f32
    %19 = vector.broadcast %cst_17 : f32 to vector<16x16xf32>
    %20 = arith.mulf %19, %18 : vector<16x16xf32>
    %21 = arith.addf %2, %20 : vector<16x16xf32>
    %cst_18 = arith.constant 3.441360e-01 : f32
    %22 = vector.broadcast %cst_18 : f32 to vector<16x16xf32>
    %23 = arith.mulf %22, %11 : vector<16x16xf32>
    %24 = arith.subf %2, %23 : vector<16x16xf32>
    %cst_19 = arith.constant 7.141360e-01 : f32
    %25 = vector.broadcast %cst_19 : f32 to vector<16x16xf32>
    %26 = arith.mulf %25, %18 : vector<16x16xf32>
    %27 = arith.subf %24, %26 : vector<16x16xf32>
    %cst_20 = arith.constant 1.772000e+00 : f32
    %28 = vector.broadcast %cst_20 : f32 to vector<16x16xf32>
    %29 = arith.mulf %28, %11 : vector<16x16xf32>
    %30 = arith.addf %2, %29 : vector<16x16xf32>
    %cst_21 = arith.constant 0.000000e+00 : f32
    %cst_22 = arith.constant 2.550000e+02 : f32
    %31 = vector.broadcast %cst_21 : f32 to vector<16x16xf32>
    %32 = arith.maximumf %31, %21 : vector<16x16xf32>
    %33 = vector.broadcast %cst_22 : f32 to vector<16x16xf32>
    %34 = arith.minimumf %33, %32 : vector<16x16xf32>
    %cst_23 = arith.constant 0.00392156886 : f32
    %35 = vector.broadcast %cst_23 : f32 to vector<16x16xf32>
    %36 = arith.mulf %34, %35 : vector<16x16xf32>
    %c0_24 = arith.constant 0 : index
    %c0_25 = arith.constant 0 : index
    %c0_26 = arith.constant 0 : index
    %c0_27 = arith.constant 0 : index
    %37 = vector.load %arg8[%c0_24, %c0_25, %c0_26, %c0_27] : memref<1x3x16x16xf32, #tpu.memory_space<vmem>>, vector<1x1x16x16xf32>
    %38 = vector.shape_cast %37 : vector<1x1x16x16xf32> to vector<16x16xf32>
    %39 = vector.shape_cast %36 : vector<16x16xf32> to vector<1x1x16x16xf32>
    tpu.vector_store %arg8[%c0_24, %c0_25, %c0_26, %c0_27], %39 {strides = array<i32>} : memref<1x3x16x16xf32, #tpu.memory_space<vmem>>, vector<1x1x16x16xf32>,
    %cst_28 = arith.constant 0.000000e+00 : f32
    %cst_29 = arith.constant 2.550000e+02 : f32
    %40 = vector.broadcast %cst_28 : f32 to vector<16x16xf32>
    %41 = arith.maximumf %40, %27 : vector<16x16xf32>
    %42 = vector.broadcast %cst_29 : f32 to vector<16x16xf32>
    %43 = arith.minimumf %42, %41 : vector<16x16xf32>
    %cst_30 = arith.constant 0.00392156886 : f32
    %44 = vector.broadcast %cst_30 : f32 to vector<16x16xf32>
    %45 = arith.mulf %43, %44 : vector<16x16xf32>
    %c0_31 = arith.constant 0 : index
    %c1 = arith.constant 1 : index
    %c0_32 = arith.constant 0 : index
    %c0_33 = arith.constant 0 : index
    %46 = vector.load %arg8[%c0_31, %c1, %c0_32, %c0_33] : memref<1x3x16x16xf32, #tpu.memory_space<vmem>>, vector<1x1x16x16xf32>
    %47 = vector.shape_cast %46 : vector<1x1x16x16xf32> to vector<16x16xf32>
    %48 = vector.shape_cast %45 : vector<16x16xf32> to vector<1x1x16x16xf32>
    tpu.vector_store %arg8[%c0_31, %c1, %c0_32, %c0_33], %48 {strides = array<i32>} : memref<1x3x16x16xf32, #tpu.memory_space<vmem>>, vector<1x1x16x16xf32>,
    %cst_34 = arith.constant 0.000000e+00 : f32
    %cst_35 = arith.constant 2.550000e+02 : f32
    %49 = vector.broadcast %cst_34 : f32 to vector<16x16xf32>
    %50 = arith.maximumf %49, %30 : vector<16x16xf32>
    %51 = vector.broadcast %cst_35 : f32 to vector<16x16xf32>
    %52 = arith.minimumf %51, %50 : vector<16x16xf32>
    %cst_36 = arith.constant 0.00392156886 : f32
    %53 = vector.broadcast %cst_36 : f32 to vector<16x16xf32>
    %54 = arith.mulf %52, %53 : vector<16x16xf32>
    %c0_37 = arith.constant 0 : index
    %c2 = arith.constant 2 : index
    %c0_38 = arith.constant 0 : index
    %c0_39 = arith.constant 0 : index
    %55 = vector.load %arg8[%c0_37, %c2, %c0_38, %c0_39] : memref<1x3x16x16xf32, #tpu.memory_space<vmem>>, vector<1x1x16x16xf32>
    %56 = vector.shape_cast %55 : vector<1x1x16x16xf32> to vector<16x16xf32>
    %57 = vector.shape_cast %54 : vector<16x16xf32> to vector<1x1x16x16xf32>
    tpu.vector_store %arg8[%c0_37, %c2, %c0_38, %c0_39], %57 {strides = array<i32>} : memref<1x3x16x16xf32, #tpu.memory_space<vmem>>, vector<1x1x16x16xf32>,
    return
  }
  func.func @transform_0(%arg0: i32, %arg1: i32, %arg2: i32) -> (i32, i32, i32) {
    %c0_i32 = arith.constant 0 : i32
    return %arg0, %arg1, %arg2 : i32, i32, i32
  }
  func.func @transform_1(%arg0: i32, %arg1: i32, %arg2: i32) -> (i32, i32, i32) {
    %c0_i32 = arith.constant 0 : i32
    return %arg0, %arg1, %arg2 : i32, i32, i32
  }
  func.func @transform_2(%arg0: i32, %arg1: i32, %arg2: i32) -> (i32, i32, i32) {
    %c0_i32 = arith.constant 0 : i32
    return %arg0, %arg1, %arg2 : i32, i32, i32
  }
  func.func @transform_3(%arg0: i32, %arg1: i32, %arg2: i32) -> (i32, i32) {
    %c0_i32 = arith.constant 0 : i32
    %c0_i32_0 = arith.constant 0 : i32
    %c0_i32_1 = arith.constant 0 : i32
    return %c0_i32, %c0_i32_0 : i32, i32
  }
  func.func @transform_4(%arg0: i32, %arg1: i32, %arg2: i32) -> (i32, i32) {
    %c0_i32 = arith.constant 0 : i32
    %c0_i32_0 = arith.constant 0 : i32
    %c0_i32_1 = arith.constant 0 : i32
    return %c0_i32, %c0_i32_0 : i32, i32
  }
  func.func @transform_5(%arg0: i32, %arg1: i32, %arg2: i32) -> (i32, i32, i32, i32) {
    %c0_i32 = arith.constant 0 : i32
    %c0_i32_0 = arith.constant 0 : i32
    return %arg0, %c0_i32, %arg1, %arg2 : i32, i32, i32, i32
  }
}

</mosaic_0001>

<bundles_post_ra>
// kernel: _lambda_.4
= control target key start
LH: loop header
LB: loop body
LE: loop exit
PB: predicated region body
PF: predicated region fallthrough
CT: control target
= control target key end

     0   :  { %10 = vsyncpa [#allocation3], 0  ;;  %s781_s18 = smov [#allocation2]   ;;  %s782_s20 = smov 128   ;;  %s1234_s0 = inlined_call_operand.vmem [shape: f32[1,128], index: 0, kind: input, shape index: {}]   ;;  %s1235_s1 = inlined_call_operand.vmem [shape: f32[1,128], index: 1, kind: input, shape index: {}]   ;;  %s1236_s2 = inlined_call_operand.hbm [shape: f32[128,128], index: 2, kind: input, shape index: {}]   ;;  %s1237_s3 = inlined_call_operand.vmem [shape: bf16[1,128], index: 3, kind: output, shape index: {0}]   ;;  %s1238_s4 = inlined_call_operand.vmem [shape: bf16[1,128], index: 4, kind: output, shape index: {1}]  }
   0x1   :  { %s19_s17 = sshll.u32 %s1236_s2, 4  ;;  %s21_s19 = sshll.u32 %s781_s18, 4  ;;  %s20_s17 = int_to_ptr.hbm [resolvable:$true] %s19_s17  ;;  %s22_s19 = int_to_ptr.vmem [resolvable:$true] %s21_s19 }
   0x2   :  { %s783_s21 = smov 8  }
   0x3   :  { %27 = dma.hbm_to_vmem [thread:$0]  %s20_s17, 2048, %s22_s19, [#allocation3], %s782_s20, %s782_s20, %s783_s21  }
   0x4   :  { %779 = dma.done.wait [#allocation3], 2048  }
   0x5   :  { %780 = vsyncadd [#allocation3], 4294965248  ;;  %v47_v0 = vld [vmem:[#allocation2 + $0x78] sm:$0xff]  ;;  %v46_v1 = vld [vmem:[#allocation2 + $0x70] sm:$0xff]  ;;  %vm391_vm0 = vcmask 1040384  }
   0x6   :  { %v45_v2 = vld [vmem:[#allocation2 + $0x68] sm:$0xff]  ;;  %v812_v3 = vand.u32 4294901760, %v47_v0  ;;  %v814_v4 = vand.u32 4294901760, %v46_v1  ;;  %v44_v6 = vld [vmem:[#allocation2 + $0x60] sm:$0xff]  ;;  %v43_v7 = vld [vmem:[#allocation2 + $0x58] sm:$0xff] }
   0x7   :  { %v816_v5 = vand.u32 4294901760, %v45_v2  ;;  %v42_v8 = vld [vmem:[#allocation2 + $0x50] sm:$0xff]  ;;  %v818_v9 = vand.u32 4294901760, %v44_v6  ;;  %v820_v10 = vand.u32 4294901760, %v43_v7  ;;  %v41_v12 = vld [vmem:[#allocation2 + $0x48] sm:$0xff]  ;;  %v40_v13 = vld [vmem:[#allocation2 + $0x40] sm:$0xff] }
   0x8   :  { %v822_v11 = vand.u32 4294901760, %v42_v8  ;;  %v825_v14 = vsub.f32 %v47_v0, %v812_v3  ;;  %50 = vmatpush.msra.mxu0 %v812_v3  ;;  %v829_v15 = vsub.f32 %v46_v1, %v814_v4  ;;  %246 = vmatpush.msra.mxu3 %v812_v3  ;;  %v835_v17 = vand.u32 4294901760, %v41_v12  ;;  %v39_v25 = vld [vmem:[#allocation2 + $0x38] sm:$0xff]  ;;  %v38_v34 = vld [vmem:[#allocation2 + $0x30] sm:$0xff]  ;;  %v37_v35 = vld [vmem:[#allocation2 + $0x28] sm:$0xff] }
   0x9   :  { %v833_v16 = vsub.f32 %v45_v2, %v816_v5  ;;  %v838_v18 = vsub.f32 %v44_v6, %v818_v9  ;;  %v841_v19 = vsub.f32 %v43_v7, %v820_v10  ;;  %v857_v24 = vand.u32 4294901760, %v40_v13  ;;  %v36_v42 = vld [vmem:[#allocation2 + $0x20] sm:$0xff]  ;;  %v35_v48 = vld [vmem:[#allocation2 + $0x18] sm:$0xff]  ;;  %v34_v54 = vld [vmem:[#allocation2 + $0x10] sm:$0xff] }
   0xa   :  { %v844_v20 = vsub.f32 %v42_v8, %v822_v11  ;;  %193 = vmatpush.msra.mxu2 %v825_v14  ;;  %52 = vmatpush.msra.mxu0 %v814_v4  ;;  %v849_v21 = vand.u32 4294901760, %v825_v14  ;;  %v852_v22 = vand.u32 4294901760, %v829_v15  ;;  %v867_v28 = vsub.f32 %v41_v12, %v835_v17  ;;  %v33_v60 = vld [vmem:[#allocation2 + $0x8] sm:$0xff]  ;;  %v32_v1 = vld [vmem:[#allocation2] sm:$0xff] }
   0xb   :  { %v855_v23 = vand.u32 4294901760, %v833_v16  ;;  %248 = vmatpush.msra.mxu3 %v814_v4  ;;  %v861_v26 = vand.u32 4294901760, %v838_v18  ;;  %v864_v27 = vand.u32 4294901760, %v841_v19  ;;  %v881_v33 = vand.u32 4294901760, %v39_v25 }
   0xc   :  { %196 = vmatpush.msra.mxu2 %v829_v15  ;;  %v93_v29 = vsub.f32 %v825_v14, %v849_v21  ;;  %54 = vmatpush.msra.mxu0 %v816_v5  ;;  %v99_v30 = vsub.f32 %v829_v15, %v852_v22  ;;  %v879_v32 = vand.u32 4294901760, %v844_v20  ;;  %v892_v39 = vsub.f32 %v40_v13, %v857_v24 }
   0xd   :  { %v105_v31 = vsub.f32 %v833_v16, %v855_v23  ;;  %250 = vmatpush.msra.mxu3 %v816_v5  ;;  %v111_v38 = vsub.f32 %v838_v18, %v861_v26  ;;  %v117_v40 = vsub.f32 %v841_v19, %v864_v27  ;;  %v898_v41 = vand.u32 4294901760, %v867_v28 }
   0xe   :  { %v883_v36 = vand.u32 4294901760, %v93_v29  ;;  %199 = vmatpush.msra.mxu2 %v833_v16  ;;  %v886_v37 = vand.u32 4294901760, %v99_v30  ;;  %56 = vmatpush.msra.mxu0 %v818_v9  ;;  %v905_v44 = vsub.f32 %v39_v25, %v881_v33  ;;  %v907_v45 = vand.u32 4294901760, %v38_v34 }
   0xf   :  { %252 = vmatpush.msra.mxu3 %v818_v9  ;;  %v902_v43 = vand.u32 4294901760, %v105_v31  ;;  %v909_v46 = vand.u32 4294901760, %v37_v35  ;;  %v123_v47 = vsub.f32 %v844_v20, %v879_v32  ;;  %v917_v49 = vand.u32 4294901760, %v111_v38 }
  0x10   :  { %95 = vmatpush.msra.mxu1 %v883_v36  ;;  %202 = vmatpush.msra.mxu2 %v838_v18  ;;  %v920_v50 = vand.u32 4294901760, %v892_v39  ;;  %v923_v51 = vsub.f32 %v38_v34, %v907_v45  ;;  %v925_v52 = vand.u32 4294901760, %v36_v42  ;;  %v129_v53 = vsub.f32 %v867_v28, %v898_v41 }
  0x11   :  { %58 = vmatpush.msra.mxu0 %v820_v10  ;;  %254 = vmatpush.msra.mxu3 %v820_v10  ;;  %v933_v55 = vand.u32 4294901760, %v117_v40  ;;  %v936_v56 = vand.u32 4294901760, %v905_v44  ;;  %v939_v57 = vsub.f32 %v37_v35, %v909_v46  ;;  %v941_v58 = vand.u32 4294901760, %v35_v48 }
  0x12   :  { %101 = vmatpush.msra.mxu1 %v886_v37  ;;  %205 = vmatpush.msra.mxu2 %v841_v19  ;;  %v944_v59 = vand.u32 4294901760, %v123_v47  ;;  %v135_v61 = vsub.f32 %v892_v39, %v920_v50  ;;  %v952_v62 = vand.u32 4294901760, %v923_v51  ;;  %v955_v63 = vsub.f32 %v36_v42, %v925_v52 }
  0x13   :  { %60 = vmatpush.msra.mxu0 %v822_v11  ;;  %256 = vmatpush.msra.mxu3 %v822_v11  ;;  %v957_v0 = vand.u32 4294901760, %v34_v54  ;;  %v960_v2 = vand.u32 4294901760, %v129_v53  ;;  %v141_v6 = vsub.f32 %v905_v44, %v936_v56  ;;  %v968_v7 = vand.u32 4294901760, %v939_v57 }
  0x14   :  { %107 = vmatpush.msra.mxu1 %v902_v43  ;;  %208 = vmatpush.msra.mxu2 %v844_v20  ;;  %1241 = vst [vmem:[#allocation5_spill] sm:$0xff] %v955_v63  ;;  %v971_v8 = vsub.f32 %v35_v48, %v941_v58  ;;  %v973_v12 = vand.u32 4294901760, %v33_v60  ;;  %v977_v13 = vand.u32 4294901760, %v32_v1  ;;  %v981_v25 = vand.u32 4294901760, %v135_v61 }
  0x15   :  { %62 = vmatpush.msra.mxu0 %v835_v17  ;;  %258 = vmatpush.msra.mxu3 %v835_v17  ;;  %v147_v29 = vsub.f32 %v923_v51, %v952_v62  ;;  %v986_v30 = vand.u32 4294901760, %v955_v63  ;;  %v989_v31 = vsub.f32 %v34_v54, %v957_v0  ;;  %v995_v34 = vand.u32 4294901760, %v141_v6 }
  0x16   :  { %113 = vmatpush.msra.mxu1 %v917_v49  ;;  %211 = vmatpush.msra.mxu2 %v867_v28  ;;  %1242 = vst [vmem:[#allocation6_spill] sm:$0xff] %v971_v8  ;;  %v153_v35 = vsub.f32 %v939_v57, %v968_v7  ;;  %v1000_v38 = vand.u32 4294901760, %v971_v8  ;;  %v1003_v40 = vsub.f32 %v33_v60, %v973_v12  ;;  %vm392_vm1 = vsmask.f32 256 }
  0x17   :  { %64 = vmatpush.msra.mxu0 %v857_v24  ;;  %260 = vmatpush.msra.mxu3 %v857_v24  ;;  %v1009_v42 = vand.u32 4294901760, %v147_v29  ;;  %v159_v47 = vsub.f32 %v955_v63, %v986_v30  ;;  %v1014_v48 = vand.u32 4294901760, %v989_v31  ;;  %v1017_v53 = vsub.f32 %v32_v1, %v977_v13  ;;  %vm1214_vm2 = vmand %vm391_vm0, %vm392_vm1 }
  0x18   :  { %119 = vmatpush.msra.mxu1 %v933_v55  ;;  %214 = vmatpush.msra.mxu2 %v892_v39  ;;  %v1023_v54 = vand.u32 4294901760, %v153_v35  ;;  %v165_v60 = vsub.f32 %v971_v8, %v1000_v38  ;;  %v1028_v61 = vand.u32 4294901760, %v1003_v40 }
  0x19   :  { %66 = vmatpush.msra.mxu0 %v881_v33  ;;  %262 = vmatpush.msra.mxu3 %v881_v33  ;;  %v1034_v1 = vand.u32 4294901760, %v159_v47  ;;  %v171_v6 = vsub.f32 %v989_v31, %v1014_v48  ;;  %v1039_v29 = vand.u32 4294901760, %v1017_v53 }
  0x1a   :  { %125 = vmatpush.msra.mxu1 %v944_v59  ;;  %217 = vmatpush.msra.mxu2 %v905_v44  ;;  %v1045_v35 = vand.u32 4294901760, %v165_v60  ;;  %v177_v47 = vsub.f32 %v1003_v40, %v1028_v61 }
  0x1b   :  { %68 = vmatpush.msra.mxu0 %v907_v45  ;;  %264 = vmatpush.msra.mxu3 %v907_v45 }
  0x1c   :  { %131 = vmatpush.msra.mxu1 %v960_v2  ;;  %220 = vmatpush.msra.mxu2 %v923_v51  ;;  %v1061_v60 = vand.u32 4294901760, %v177_v47 }
  0x1d   :  { %70 = vmatpush.msra.mxu0 %v909_v46  ;;  %266 = vmatpush.msra.mxu3 %v909_v46 }
  0x1e   :  { %137 = vmatpush.msra.mxu1 %v981_v25  ;;  %223 = vmatpush.msra.mxu2 %v939_v57 }
  0x1f   :  { %72 = vmatpush.msra.mxu0 %v925_v52  ;;  %268 = vmatpush.msra.mxu3 %v925_v52 }
  0x20   :  { %143 = vmatpush.msra.mxu1 %v995_v34  ;;  %226 = vmatpush.msra.mxu2 %v955_v63  ;;  %v183_v63 = vsub.f32 %v1017_v53, %v1039_v29 }
  0x21   :  { %74 = vmatpush.msra.mxu0 %v941_v58  ;;  %270 = vmatpush.msra.mxu3 %v941_v58 }
  0x22   :  { %149 = vmatpush.msra.mxu1 %v1009_v42  ;;  %229 = vmatpush.msra.mxu2 %v971_v8  ;;  %v1053_v8 = vand.u32 4294901760, %v171_v6  ;;  %v1067_v6 = vand.u32 4294901760, %v183_v63  ;;  %v397_v63 = vld [vmem:[%s1235_s1] sm:$0x1] }
  0x23   :  { %76 = vmatpush.msra.mxu0 %v957_v0  ;;  %272 = vmatpush.msra.mxu3 %v957_v0 }
  0x24   :  { %155 = vmatpush.msra.mxu1 %v1023_v54  ;;  %232 = vmatpush.msra.mxu2 %v989_v31 }
  0x25   :  { %78 = vmatpush.msra.mxu0 %v973_v12  ;;  %274 = vmatpush.msra.mxu3 %v973_v12 }
  0x26   :  { %161 = vmatpush.msra.mxu1 %v1034_v1  ;;  %235 = vmatpush.msra.mxu2 %v1003_v40 }
  0x27   :  { %80 = vmatpush.msra.mxu0 %v977_v13  ;;  %276 = vmatpush.msra.mxu3 %v977_v13 }
  0x28   :  { %167 = vmatpush.msra.mxu1 %v1045_v35  ;;  %238 = vmatpush.msra.mxu2 %v1017_v53 }
  0x29   :  { %287 = vmatpush.msrb.mxu0 %v849_v21  ;;  %444 = vmatpush.msrb.mxu3 %v883_v36  ;;  %v48_v36 = vld [vmem:[%s1234_s0] sm:$0x1] }
  0x2a   :  { %399 = vmatpush.msrb.mxu2 %v812_v3  ;;  %173 = vmatpush.msra.mxu1 %v1053_v8 }
  0x2b   :  { %291 = vmatpush.msrb.mxu0 %v852_v22  ;;  %450 = vmatpush.msrb.mxu3 %v886_v37  ;;  %v1096_v37 = vand.u32 4294901760, %v48_v36 }
  0x2c   :  { %401 = vmatpush.msrb.mxu2 %v814_v4  ;;  %179 = vmatpush.msra.mxu1 %v1061_v60 }
  0x2d   :  { %295 = vmatpush.msrb.mxu0 %v855_v23  ;;  %456 = vmatpush.msrb.mxu3 %v902_v43  ;;  %v82_v43 = vsub.f32 %v48_v36, %v1096_v37 }
  0x2e   :  { %403 = vmatpush.msrb.mxu2 %v816_v5  ;;  %185 = vmatpush.msra.mxu1 %v1067_v6 }
  0x2f   :  { %299 = vmatpush.msrb.mxu0 %v861_v26  ;;  %462 = vmatpush.msrb.mxu3 %v917_v49  ;;  %v83_v49 = vand.u32 4294901760, %v82_v43 }
  0x30   :  { %354 = vmatpush.msrb.mxu1 %v812_v3  ;;  %405 = vmatpush.msrb.mxu2 %v818_v9 }
  0x31   :  { %303 = vmatpush.msrb.mxu0 %v864_v27  ;;  %468 = vmatpush.msrb.mxu3 %v933_v55  ;;  %v84_v55 = vsub.f32 %v82_v43, %v83_v49 }
  0x32   :  { %356 = vmatpush.msrb.mxu1 %v814_v4  ;;  %407 = vmatpush.msrb.mxu2 %v820_v10 }
  0x33   :  { %307 = vmatpush.msrb.mxu0 %v879_v32  ;;  %474 = vmatpush.msrb.mxu3 %v944_v59  ;;  %v85_v59 = vand.u32 4294901760, %v84_v55 }
  0x34   :  { %358 = vmatpush.msrb.mxu1 %v816_v5  ;;  %409 = vmatpush.msrb.mxu2 %v822_v11 }
  0x35   :  { %311 = vmatpush.msrb.mxu0 %v898_v41  ;;  %480 = vmatpush.msrb.mxu3 %v960_v2  ;;  %v740_v2 = vld [vmem:[%s1238_s4] sm:$0x1] }
  0x36   :  { %360 = vmatpush.msrb.mxu1 %v818_v9  ;;  %411 = vmatpush.msrb.mxu2 %v835_v17 }
  0x37   :  { %315 = vmatpush.msrb.mxu0 %v920_v50  ;;  %486 = vmatpush.msrb.mxu3 %v981_v25 }
  0x38   :  { %362 = vmatpush.msrb.mxu1 %v820_v10  ;;  %413 = vmatpush.msrb.mxu2 %v857_v24 }
  0x39   :  { %319 = vmatpush.msrb.mxu0 %v936_v56  ;;  %492 = vmatpush.msrb.mxu3 %v995_v34 }
  0x3a   :  { %364 = vmatpush.msrb.mxu1 %v822_v11  ;;  %415 = vmatpush.msrb.mxu2 %v881_v33 }
  0x3b   :  { %323 = vmatpush.msrb.mxu0 %v952_v62  ;;  %498 = vmatpush.msrb.mxu3 %v1009_v42 }
  0x3c   :  { %366 = vmatpush.msrb.mxu1 %v835_v17  ;;  %417 = vmatpush.msrb.mxu2 %v907_v45 }
  0x3d   :  { %327 = vmatpush.msrb.mxu0 %v968_v7  ;;  %504 = vmatpush.msrb.mxu3 %v1023_v54 }
  0x3e   :  { %368 = vmatpush.msrb.mxu1 %v857_v24  ;;  %419 = vmatpush.msrb.mxu2 %v909_v46 }
  0x3f   :  { %331 = vmatpush.msrb.mxu0 %v986_v30  ;;  %510 = vmatpush.msrb.mxu3 %v1034_v1 }
  0x40   :  { %370 = vmatpush.msrb.mxu1 %v881_v33  ;;  %421 = vmatpush.msrb.mxu2 %v925_v52 }
  0x41   :  { %335 = vmatpush.msrb.mxu0 %v1000_v38  ;;  %516 = vmatpush.msrb.mxu3 %v1045_v35 }
  0x42   :  { %372 = vmatpush.msrb.mxu1 %v907_v45  ;;  %423 = vmatpush.msrb.mxu2 %v941_v58 }
  0x43   :  { %339 = vmatpush.msrb.mxu0 %v1014_v48  ;;  %522 = vmatpush.msrb.mxu3 %v1053_v8 }
  0x44   :  { %374 = vmatpush.msrb.mxu1 %v909_v46  ;;  %425 = vmatpush.msrb.mxu2 %v957_v0 }
  0x45   :  { %343 = vmatpush.msrb.mxu0 %v1028_v61  ;;  %528 = vmatpush.msrb.mxu3 %v1061_v60 }
  0x46   :  { %376 = vmatpush.msrb.mxu1 %v925_v52  ;;  %427 = vmatpush.msrb.mxu2 %v973_v12 }
  0x47   :  { %241 = vmatmul.f32.vlgmr.msra.gmra.mxu2 %v82_v43  ;;  %347 = vmatpush.msrb.mxu0 %v1039_v29 }
  0x48   :  { %378 = vmatpush.msrb.mxu1 %v941_v58  ;;  %429 = vmatpush.msrb.mxu2 %v977_v13 }
  0x49   :  { %534 = vmatpush.msrb.mxu3 %v1067_v6  ;;  %86 = vmatmul.f32.vlgmr.msra.gmra.mxu0 %v85_v59 }
  0x4a   :  { %380 = vmatpush.msrb.mxu1 %v957_v0  ;;  %636 = vmatpush.msra.mxu2 %v849_v21  ;;  %v1149_v21 = vand.u32 4294901760, %v397_v63 }
  0x4b   :  { %280 = vmatmul.f32.vlgmr.msra.gmra.mxu3 %v83_v49  ;;  %542 = vmatpush.msra.mxu0 %v825_v14 }
  0x4c   :  { %382 = vmatpush.msrb.mxu1 %v973_v12  ;;  %640 = vmatpush.msra.mxu2 %v852_v22 }
  0x4d   :  { %703 = vmatpush.msra.mxu3 %v812_v3  ;;  %187 = vmatmul.f32.vlgmr.msra.gmra.mxu1 %v1096_v37 }
  0x4e   :  { %384 = vmatpush.msrb.mxu1 %v977_v13  ;;  %545 = vmatpush.msra.mxu0 %v829_v15 }
  0x4f   :  { %644 = vmatpush.msra.mxu2 %v855_v23  ;;  %705 = vmatpush.msra.mxu3 %v814_v4 }
  0x50   :  { %595 = vmatpush.msra.mxu1 %v812_v3  ;;  %548 = vmatpush.msra.mxu0 %v833_v16  ;;  %v431_v3 = vsub.f32 %v397_v63, %v1149_v21 }
  0x51   :  { %648 = vmatpush.msra.mxu2 %v861_v26  ;;  %707 = vmatpush.msra.mxu3 %v816_v5 }
  0x52   :  { %597 = vmatpush.msra.mxu1 %v814_v4  ;;  %551 = vmatpush.msra.mxu0 %v838_v18  ;;  %v432_v4 = vand.u32 4294901760, %v431_v3 }
  0x53   :  { %652 = vmatpush.msra.mxu2 %v864_v27  ;;  %709 = vmatpush.msra.mxu3 %v818_v9 }
  0x54   :  { %599 = vmatpush.msra.mxu1 %v816_v5  ;;  %349 = vmatmul.f32.vlgmr.msrb.gmra.mxu0 %v1096_v37  ;;  %v433_v5 = vsub.f32 %v431_v3, %v432_v4 }
  0x55   :  { %554 = vmatpush.msra.mxu0 %v841_v19  ;;  %656 = vmatpush.msra.mxu2 %v879_v32  ;;  %v394_v32 = vld [vmem:[%s1237_s3] sm:$0x1] }
  0x56   :  { %601 = vmatpush.msra.mxu1 %v818_v9  ;;  %711 = vmatpush.msra.mxu3 %v820_v10  ;;  %v434_v9 = vand.u32 4294901760, %v433_v5 }
  0x57   :  { %386 = vmatmul.f32.vlgmr.msrb.gmra.mxu1 %v1096_v37  ;;  %557 = vmatpush.msra.mxu0 %v844_v20 }
  0x58   :  { %603 = vmatpush.msra.mxu1 %v820_v10  ;;  %660 = vmatpush.msra.mxu2 %v898_v41  ;;  %v1243_v10 = vld [vmem:[#allocation5_spill] sm:$0xff] }
  0x59   :  { %713 = vmatpush.msra.mxu3 %v822_v11  ;;  %560 = vmatpush.msra.mxu0 %v867_v28 }
  0x5a   :  { %605 = vmatpush.msra.mxu1 %v822_v11  ;;  %664 = vmatpush.msra.mxu2 %v920_v50  ;;  %v1244_v11 = vld [vmem:[#allocation6_spill] sm:$0xff] }
  0x5b   :  { %715 = vmatpush.msra.mxu3 %v835_v17  ;;  %563 = vmatpush.msra.mxu0 %v892_v39 }
  0x5c   :  { %607 = vmatpush.msra.mxu1 %v835_v17  ;;  %668 = vmatpush.msra.mxu2 %v936_v56 }
  0x5d   :  { %717 = vmatpush.msra.mxu3 %v857_v24  ;;  %566 = vmatpush.msra.mxu0 %v905_v44 }
  0x5e   :  { %609 = vmatpush.msra.mxu1 %v857_v24  ;;  %672 = vmatpush.msra.mxu2 %v952_v62 }
  0x5f   :  { %719 = vmatpush.msra.mxu3 %v881_v33  ;;  %569 = vmatpush.msra.mxu0 %v923_v51 }
  0x60   :  { %611 = vmatpush.msra.mxu1 %v881_v33  ;;  %676 = vmatpush.msra.mxu2 %v968_v7 }
  0x61   :  { %721 = vmatpush.msra.mxu3 %v907_v45  ;;  %572 = vmatpush.msra.mxu0 %v939_v57 }
  0x62   :  { %613 = vmatpush.msra.mxu1 %v907_v45  ;;  %680 = vmatpush.msra.mxu2 %v986_v30 }
  0x63   :  { %723 = vmatpush.msra.mxu3 %v909_v46  ;;  %435 = vmatmul.f32.vlgmr.msrb.gmra.mxu2 %v434_v9 }
  0x64   :  { %575 = vmatpush.msra.mxu0 %v1243_v10  ;;  %615 = vmatpush.msra.mxu1 %v909_v46 }
  0x65   :  { %684 = vmatpush.msra.mxu2 %v1000_v38  ;;  %725 = vmatpush.msra.mxu3 %v925_v52 }
  0x66   :  { %536 = vmatmul.f32.vlgmr.msrb.gmra.mxu3 %v1149_v21  ;;  %578 = vmatpush.msra.mxu0 %v1244_v11 }
  0x67   :  { %617 = vmatpush.msra.mxu1 %v925_v52  ;;  %688 = vmatpush.msra.mxu2 %v1014_v48 }
  0x68   :  { %727 = vmatpush.msra.mxu3 %v941_v58  ;;  %581 = vmatpush.msra.mxu0 %v989_v31 }
  0x69   :  { %619 = vmatpush.msra.mxu1 %v941_v58  ;;  %692 = vmatpush.msra.mxu2 %v1028_v61 }
  0x6a   :  { %729 = vmatpush.msra.mxu3 %v957_v0  ;;  %584 = vmatpush.msra.mxu0 %v1003_v40 }
  0x6b   :  { %621 = vmatpush.msra.mxu1 %v957_v0  ;;  %696 = vmatpush.msra.mxu2 %v1039_v29 }
  0x6c   :  { %731 = vmatpush.msra.mxu3 %v973_v12  ;;  %698 = vmatmul.f32.vlgmr.msra.gmra.mxu2 %v1149_v21 }
  0x6d   :  { %587 = vmatpush.msra.mxu0 %v1017_v53  ;;  %623 = vmatpush.msra.mxu1 %v973_v12 }
  0x6e   :  { %733 = vmatpush.msra.mxu3 %v977_v13  ;;  %590 = vmatmul.f32.vlgmr.msra.gmra.mxu0 %v431_v3 }
  0x6f   :  { %735 = vmatmul.f32.vlgmr.msra.gmra.mxu3 %v1149_v21  ;;  %625 = vmatpush.msra.mxu1 %v977_v13 }
  0x70   :  { %629 = vmatmul.f32.vlgmr.msra.gmra.mxu1 %v432_v4 }
  0xc6   :  { %v87_v14 = vpop.f32.mrf.mxu0 }
  0xc7   :  { %v88_v15 = vadd.f32 128.0, %v87_v14 }
  0xca   :  { %v188_v16 = vpop.f32.mrf.mxu1  ;;  %v242_v17 = vpop.f32.mrf.mxu2 }
  0xcb   :  { %v189_v18 = vadd.f32 %v188_v16, %v88_v15 }
  0xcd   :  { %v243_v19 = vadd.f32 %v242_v17, %v189_v18 }
  0xce   :  { %v281_v20 = vpop.f32.mrf.mxu3 }
  0xcf   :  { %v282_v22 = vadd.f32 %v281_v20, %v243_v19 }
  0xd1   :  { %v350_v23 = vpop.f32.mrf.mxu0 }
  0xd2   :  { %v351_v24 = vadd.f32 %v350_v23, %v282_v22 }
  0xd4   :  { %v387_v26 = vpop.f32.mrf.mxu1 }
  0xd5   :  { %v388_v27 = vadd.f32 %v387_v26, %v351_v24 }
  0xd7   :  { %v390_v33 = vpack.c.bf16 %v388_v27, %v388_v27 }
  0xd9   :  { %v395_v39 = vsel %vm1214_vm2, %v390_v33, %v394_v32 }
  0xda   :  { %396 = vst [vmem:[%s1237_s3] sm:$0x1] %v395_v39 }
  0xe6   :  { %v436_v41 = vpop.f32.mrf.mxu2 }
  0xe7   :  { %v437_v44 = vadd.f32 128.0, %v436_v41 }
  0xe9   :  { %v537_v45 = vpop.f32.mrf.mxu3 }
  0xea   :  { %v538_v46 = vadd.f32 %v537_v45, %v437_v44 }
  0xeb   :  { %v591_v50 = vpop.f32.mrf.mxu0 }
  0xec   :  { %v592_v51 = vadd.f32 %v591_v50, %v538_v46 }
  0xed   :  { %v630_v52 = vpop.f32.mrf.mxu1 }
  0xee   :  { %v631_v56 = vadd.f32 %v630_v52, %v592_v51 }
  0xef   :  { %v699_v57 = vpop.f32.mrf.mxu2 }
  0xf0   :  { %v700_v58 = vadd.f32 %v699_v57, %v631_v56 }
  0xf2   :  { %v736_v62 = vpop.f32.mrf.mxu3 }
  0xf3   :  { %v737_v0 = vadd.f32 %v736_v62, %v700_v58 }
  0xf5   :  { %v739_v7 = vpack.c.bf16 %v737_v0, %v737_v0 }
  0xf7   :  { %v741_v8 = vsel %vm1214_vm2, %v739_v7, %v740_v2 }
  0xf8   :  { %742 = vst [vmem:[%s1238_s4] sm:$0x1] %v741_v8 }
  0xf9   :  { %751 = vsyncpa [#allocation3], 1 }

// kernel: _lambda_.3
= control target key start
LH: loop header
LB: loop body
LE: loop exit
PB: predicated region body
PF: predicated region fallthrough
CT: control target
= control target key end

     0   :  { %7 = vsyncpa [#allocation3], 0  ;;  %s421_s12 = smov [#allocation2]   ;;  %s422_s14 = smov 128   ;;  %s686_s0 = inlined_call_operand.vmem [shape: f32[4,128], index: 0, kind: input, shape index: {}]   ;;  %s687_s1 = inlined_call_operand.hbm [shape: f32[128,128], index: 1, kind: input, shape index: {}]   ;;  %s688_s2 = inlined_call_operand.vmem [shape: bf16[4,128], index: 2, kind: output, shape index: {}]  }
   0x1   :  { %s14_s11 = sshll.u32 %s687_s1, 4  ;;  %s16_s13 = sshll.u32 %s421_s12, 4  ;;  %s15_s11 = int_to_ptr.hbm [resolvable:$true] %s14_s11  ;;  %s17_s13 = int_to_ptr.vmem [resolvable:$true] %s16_s13 }
   0x2   :  { %s423_s15 = smov 8  }
   0x3   :  { %22 = dma.hbm_to_vmem [thread:$0]  %s15_s11, 2048, %s17_s13, [#allocation3], %s422_s14, %s422_s14, %s423_s15  }
   0x4   :  { %419 = dma.done.wait [#allocation3], 2048  }
   0x5   :  { %420 = vsyncadd [#allocation3], 4294965248  ;;  %v42_v0 = vld [vmem:[#allocation2 + $0x78] sm:$0xff]  ;;  %v41_v1 = vld [vmem:[#allocation2 + $0x70] sm:$0xff] }
   0x6   :  { %v40_v2 = vld [vmem:[#allocation2 + $0x68] sm:$0xff]  ;;  %v442_v3 = vand.u32 4294901760, %v42_v0  ;;  %v444_v4 = vand.u32 4294901760, %v41_v1  ;;  %v39_v6 = vld [vmem:[#allocation2 + $0x60] sm:$0xff]  ;;  %v38_v7 = vld [vmem:[#allocation2 + $0x58] sm:$0xff] }
   0x7   :  { %v446_v5 = vand.u32 4294901760, %v40_v2  ;;  %v37_v8 = vld [vmem:[#allocation2 + $0x50] sm:$0xff]  ;;  %v448_v9 = vand.u32 4294901760, %v39_v6  ;;  %v450_v10 = vand.u32 4294901760, %v38_v7  ;;  %v36_v12 = vld [vmem:[#allocation2 + $0x48] sm:$0xff]  ;;  %v35_v13 = vld [vmem:[#allocation2 + $0x40] sm:$0xff] }
   0x8   :  { %v452_v11 = vand.u32 4294901760, %v37_v8  ;;  %45 = vmatpush.msra.mxu0 %v442_v3  ;;  %v456_v14 = vsub.f32 %v42_v0, %v442_v3  ;;  %v459_v15 = vsub.f32 %v41_v1, %v444_v4  ;;  %v464_v17 = vand.u32 4294901760, %v36_v12  ;;  %241 = vmatpush.msra.mxu3 %v442_v3  ;;  %v34_v21 = vld [vmem:[#allocation2 + $0x38] sm:$0xff]  ;;  %v33_v34 = vld [vmem:[#allocation2 + $0x30] sm:$0xff]  ;;  %v32_v35 = vld [vmem:[#allocation2 + $0x28] sm:$0xff] }
   0x9   :  { %v462_v16 = vsub.f32 %v40_v2, %v446_v5  ;;  %v468_v18 = vsub.f32 %v39_v6, %v448_v9  ;;  %v471_v19 = vsub.f32 %v38_v7, %v450_v10  ;;  %v473_v20 = vand.u32 4294901760, %v35_v13  ;;  %v31_v42 = vld [vmem:[#allocation2 + $0x20] sm:$0xff]  ;;  %v30_v47 = vld [vmem:[#allocation2 + $0x18] sm:$0xff]  ;;  %v29_v53 = vld [vmem:[#allocation2 + $0x10] sm:$0xff] }
   0xa   :  { %47 = vmatpush.msra.mxu0 %v444_v4  ;;  %v87_v22 = vand.u32 4294901760, %v456_v14  ;;  %v93_v23 = vand.u32 4294901760, %v459_v15  ;;  %v480_v25 = vsub.f32 %v37_v8, %v452_v11  ;;  %188 = vmatpush.msra.mxu2 %v456_v14  ;;  %v486_v28 = vsub.f32 %v36_v12, %v464_v17  ;;  %v28_v61 = vld [vmem:[#allocation2 + $0x8] sm:$0xff]  ;;  %v27_v2 = vld [vmem:[#allocation2] sm:$0xff] }
   0xb   :  { %v99_v24 = vand.u32 4294901760, %v462_v16  ;;  %v105_v26 = vand.u32 4294901760, %v468_v18  ;;  %v111_v27 = vand.u32 4294901760, %v471_v19  ;;  %243 = vmatpush.msra.mxu3 %v444_v4  ;;  %v499_v32 = vand.u32 4294901760, %v34_v21 }
   0xc   :  { %v88_v29 = vsub.f32 %v456_v14, %v87_v22  ;;  %49 = vmatpush.msra.mxu0 %v446_v5  ;;  %v94_v30 = vsub.f32 %v459_v15, %v93_v23  ;;  %191 = vmatpush.msra.mxu2 %v459_v15  ;;  %v503_v33 = vsub.f32 %v35_v13, %v473_v20  ;;  %v117_v39 = vand.u32 4294901760, %v480_v25 }
   0xd   :  { %v100_v31 = vsub.f32 %v462_v16, %v99_v24  ;;  %245 = vmatpush.msra.mxu3 %v446_v5  ;;  %v106_v38 = vsub.f32 %v468_v18, %v105_v26  ;;  %v112_v40 = vsub.f32 %v471_v19, %v111_v27  ;;  %v123_v41 = vand.u32 4294901760, %v486_v28 }
   0xe   :  { %v89_v36 = vand.u32 4294901760, %v88_v29  ;;  %v95_v37 = vand.u32 4294901760, %v94_v30  ;;  %51 = vmatpush.msra.mxu0 %v448_v9  ;;  %194 = vmatpush.msra.mxu2 %v462_v16  ;;  %v518_v44 = vand.u32 4294901760, %v33_v34  ;;  %v521_v45 = vsub.f32 %v34_v21, %v499_v32  ;;  %v43_v29 = vld [vmem:[%s686_s0] sm:$0xf] }
   0xf   :  { %247 = vmatpush.msra.mxu3 %v448_v9  ;;  %v101_v43 = vand.u32 4294901760, %v100_v31  ;;  %v523_v46 = vand.u32 4294901760, %v32_v35  ;;  %v129_v48 = vand.u32 4294901760, %v503_v33  ;;  %v107_v49 = vand.u32 4294901760, %v106_v38 }
  0x10   :  { %90 = vmatpush.msra.mxu1 %v89_v36  ;;  %53 = vmatpush.msra.mxu0 %v450_v10  ;;  %v118_v50 = vsub.f32 %v480_v25, %v117_v39  ;;  %v533_v51 = vsub.f32 %v33_v34, %v518_v44  ;;  %v535_v52 = vand.u32 4294901760, %v31_v42  ;;  %v537_v54 = vand.u32 4294901760, %v30_v47 }
  0x11   :  { %197 = vmatpush.msra.mxu2 %v468_v18  ;;  %249 = vmatpush.msra.mxu3 %v450_v10  ;;  %v113_v55 = vand.u32 4294901760, %v112_v40  ;;  %v124_v56 = vsub.f32 %v486_v28, %v123_v41  ;;  %v135_v57 = vand.u32 4294901760, %v521_v45  ;;  %v547_v58 = vsub.f32 %v32_v35, %v523_v46 }
  0x12   :  { %96 = vmatpush.msra.mxu1 %v95_v37  ;;  %55 = vmatpush.msra.mxu0 %v452_v11  ;;  %v130_v59 = vsub.f32 %v503_v33, %v129_v48  ;;  %v552_v60 = vand.u32 4294901760, %v29_v53  ;;  %v119_v62 = vand.u32 4294901760, %v118_v50  ;;  %v141_v63 = vand.u32 4294901760, %v533_v51 }
  0x13   :  { %200 = vmatpush.msra.mxu2 %v471_v19  ;;  %251 = vmatpush.msra.mxu3 %v452_v11  ;;  %v559_v0 = vsub.f32 %v31_v42, %v535_v52  ;;  %v562_v1 = vsub.f32 %v30_v47, %v537_v54  ;;  %v125_v6 = vand.u32 4294901760, %v124_v56  ;;  %v136_v7 = vsub.f32 %v521_v45, %v135_v57 }
  0x14   :  { %102 = vmatpush.msra.mxu1 %v101_v43  ;;  %57 = vmatpush.msra.mxu0 %v464_v17  ;;  %v147_v8 = vand.u32 4294901760, %v547_v58  ;;  %v571_v12 = vand.u32 4294901760, %v28_v61  ;;  %v131_v13 = vand.u32 4294901760, %v130_v59  ;;  %v574_v21 = vsub.f32 %v29_v53, %v552_v60 }
  0x15   :  { %203 = vmatpush.msra.mxu2 %v480_v25  ;;  %253 = vmatpush.msra.mxu3 %v464_v17  ;;  %v142_v30 = vsub.f32 %v533_v51, %v141_v63  ;;  %v153_v31 = vand.u32 4294901760, %v559_v0  ;;  %v586_v34 = vand.u32 4294901760, %v27_v2  ;;  %v588_v35 = vand.u32 4294901760, %v43_v29 }
  0x16   :  { %108 = vmatpush.msra.mxu1 %v107_v49  ;;  %59 = vmatpush.msra.mxu0 %v473_v20  ;;  %v159_v36 = vand.u32 4294901760, %v562_v1  ;;  %v137_v37 = vand.u32 4294901760, %v136_v7  ;;  %v148_v38 = vsub.f32 %v547_v58, %v147_v8  ;;  %v598_v40 = vsub.f32 %v28_v61, %v571_v12 }
  0x17   :  { %206 = vmatpush.msra.mxu2 %v486_v28  ;;  %255 = vmatpush.msra.mxu3 %v473_v20  ;;  %v77_v42 = vsub.f32 %v43_v29, %v588_v35  ;;  %v143_v43 = vand.u32 4294901760, %v142_v30  ;;  %v154_v47 = vsub.f32 %v559_v0, %v153_v31  ;;  %v165_v49 = vand.u32 4294901760, %v574_v21 }
  0x18   :  { %114 = vmatpush.msra.mxu1 %v113_v55  ;;  %61 = vmatpush.msra.mxu0 %v499_v32  ;;  %v609_v50 = vsub.f32 %v27_v2, %v586_v34  ;;  %v149_v53 = vand.u32 4294901760, %v148_v38  ;;  %v160_v55 = vsub.f32 %v562_v1, %v159_v36  ;;  %v171_v56 = vand.u32 4294901760, %v598_v40 }
  0x19   :  { %209 = vmatpush.msra.mxu2 %v503_v33  ;;  %257 = vmatpush.msra.mxu3 %v499_v32  ;;  %v78_v59 = vand.u32 4294901760, %v77_v42  ;;  %v155_v61 = vand.u32 4294901760, %v154_v47 }
  0x1a   :  { %120 = vmatpush.msra.mxu1 %v119_v62  ;;  %63 = vmatpush.msra.mxu0 %v518_v44  ;;  %v166_v62 = vsub.f32 %v574_v21, %v165_v49  ;;  %v177_v2 = vand.u32 4294901760, %v609_v50  ;;  %v172_v7 = vsub.f32 %v598_v40, %v171_v56 }
  0x1b   :  { %212 = vmatpush.msra.mxu2 %v521_v45  ;;  %259 = vmatpush.msra.mxu3 %v518_v44 }
  0x1c   :  { %126 = vmatpush.msra.mxu1 %v125_v6  ;;  %65 = vmatpush.msra.mxu0 %v523_v46  ;;  %v161_v6 = vand.u32 4294901760, %v160_v55  ;;  %v167_v29 = vand.u32 4294901760, %v166_v62  ;;  %v178_v30 = vsub.f32 %v609_v50, %v177_v2 }
  0x1d   :  { %215 = vmatpush.msra.mxu2 %v533_v51  ;;  %261 = vmatpush.msra.mxu3 %v523_v46 }
  0x1e   :  { %132 = vmatpush.msra.mxu1 %v131_v13  ;;  %67 = vmatpush.msra.mxu0 %v535_v52  ;;  %v79_v13 = vsub.f32 %v77_v42, %v78_v59 }
  0x1f   :  { %218 = vmatpush.msra.mxu2 %v547_v58  ;;  %263 = vmatpush.msra.mxu3 %v535_v52 }
  0x20   :  { %138 = vmatpush.msra.mxu1 %v137_v37  ;;  %69 = vmatpush.msra.mxu0 %v537_v54  ;;  %v173_v37 = vand.u32 4294901760, %v172_v7  ;;  %v80_v38 = vand.u32 4294901760, %v79_v13 }
  0x21   :  { %221 = vmatpush.msra.mxu2 %v559_v0  ;;  %265 = vmatpush.msra.mxu3 %v537_v54 }
  0x22   :  { %144 = vmatpush.msra.mxu1 %v143_v43  ;;  %71 = vmatpush.msra.mxu0 %v552_v60  ;;  %v179_v43 = vand.u32 4294901760, %v178_v30 }
  0x23   :  { %224 = vmatpush.msra.mxu2 %v562_v1  ;;  %267 = vmatpush.msra.mxu3 %v552_v60 }
  0x24   :  { %150 = vmatpush.msra.mxu1 %v149_v53  ;;  %73 = vmatpush.msra.mxu0 %v571_v12 }
  0x25   :  { %227 = vmatpush.msra.mxu2 %v574_v21  ;;  %269 = vmatpush.msra.mxu3 %v571_v12 }
  0x26   :  { %156 = vmatpush.msra.mxu1 %v155_v61  ;;  %75 = vmatpush.msra.mxu0 %v586_v34 }
  0x27   :  { %230 = vmatpush.msra.mxu2 %v598_v40  ;;  %271 = vmatpush.msra.mxu3 %v586_v34 }
  0x28   :  { %282 = vmatpush.msrb.mxu0 %v87_v22  ;;  %162 = vmatpush.msra.mxu1 %v161_v6 }
  0x29   :  { %233 = vmatpush.msra.mxu2 %v609_v50  ;;  %275 = vmatmul.f32.vlgmr.msra.gmra.mxu3 %v78_v59 }
  0x2a   :  { %286 = vmatpush.msrb.mxu0 %v93_v23  ;;  %168 = vmatpush.msra.mxu1 %v167_v29 }
  0x2b   :  { %236 = vmatmul.f32.vlgmr.msra.gmra.mxu2 %v77_v42  ;;  %81 = vmatmul.f32.vlgmr.msra.gmra.mxu0 %v80_v38 }
  0x2c   :  { %290 = vmatpush.msrb.mxu0 %v99_v24  ;;  %174 = vmatpush.msra.mxu1 %v173_v37 }
  0x2e   :  { %294 = vmatpush.msrb.mxu0 %v105_v26  ;;  %180 = vmatpush.msra.mxu1 %v179_v43 }
  0x2f   :  { %182 = vmatmul.f32.vlgmr.msra.gmra.mxu1 %v588_v35 }
  0x30   :  { %349 = vmatpush.msrb.mxu1 %v442_v3  ;;  %298 = vmatpush.msrb.mxu0 %v111_v27 }
  0x32   :  { %351 = vmatpush.msrb.mxu1 %v444_v4  ;;  %302 = vmatpush.msrb.mxu0 %v117_v39 }
  0x34   :  { %353 = vmatpush.msrb.mxu1 %v446_v5  ;;  %306 = vmatpush.msrb.mxu0 %v123_v41 }
  0x36   :  { %355 = vmatpush.msrb.mxu1 %v448_v9  ;;  %310 = vmatpush.msrb.mxu0 %v129_v48 }
  0x38   :  { %357 = vmatpush.msrb.mxu1 %v450_v10  ;;  %314 = vmatpush.msrb.mxu0 %v135_v57 }
  0x3a   :  { %359 = vmatpush.msrb.mxu1 %v452_v11  ;;  %318 = vmatpush.msrb.mxu0 %v141_v63 }
  0x3c   :  { %361 = vmatpush.msrb.mxu1 %v464_v17  ;;  %322 = vmatpush.msrb.mxu0 %v147_v8 }
  0x3e   :  { %363 = vmatpush.msrb.mxu1 %v473_v20  ;;  %326 = vmatpush.msrb.mxu0 %v153_v31 }
  0x40   :  { %365 = vmatpush.msrb.mxu1 %v499_v32  ;;  %330 = vmatpush.msrb.mxu0 %v159_v36 }
  0x42   :  { %367 = vmatpush.msrb.mxu1 %v518_v44  ;;  %334 = vmatpush.msrb.mxu0 %v165_v49 }
  0x44   :  { %369 = vmatpush.msrb.mxu1 %v523_v46  ;;  %338 = vmatpush.msrb.mxu0 %v171_v56 }
  0x46   :  { %371 = vmatpush.msrb.mxu1 %v535_v52  ;;  %342 = vmatpush.msrb.mxu0 %v177_v2 }
  0x47   :  { %344 = vmatmul.f32.vlgmr.msrb.gmra.mxu0 %v588_v35 }
  0x48   :  { %373 = vmatpush.msrb.mxu1 %v537_v54 }
  0x4a   :  { %375 = vmatpush.msrb.mxu1 %v552_v60 }
  0x4c   :  { %377 = vmatpush.msrb.mxu1 %v571_v12 }
  0x4e   :  { %379 = vmatpush.msrb.mxu1 %v586_v34 }
  0x4f   :  { %381 = vmatmul.f32.vlgmr.msrb.gmra.mxu1 %v588_v35 }
  0xa8   :  { %v82_v3 = vpop.f32.mrf.mxu0 }
  0xa9   :  { %v83_v4 = vadd.f32 128.0, %v82_v3 }
  0xac   :  { %v183_v5 = vpop.f32.mrf.mxu1  ;;  %v276_v14 = vpop.f32.mrf.mxu3 }
  0xad   :  { %v184_v9 = vadd.f32 %v183_v5, %v83_v4 }
  0xae   :  { %v237_v10 = vpop.f32.mrf.mxu2 }
  0xaf   :  { %v238_v11 = vadd.f32 %v237_v10, %v184_v9 }
  0xb1   :  { %v277_v15 = vadd.f32 %v276_v14, %v238_v11 }
  0xc4   :  { %v345_v16 = vpop.f32.mrf.mxu0 }
  0xc5   :  { %v346_v17 = vadd.f32 %v345_v16, %v277_v15 }
  0xcc   :  { %v382_v18 = vpop.f32.mrf.mxu1 }
  0xcd   :  { %v383_v19 = vadd.f32 %v382_v18, %v346_v17 }
  0xcf   :  { %v385_v20 = vpack.c.bf16 %v383_v19, %v383_v19 }
  0xd1   :  { %386 = vst [vmem:[%s688_s2] sm:$0x3] %v385_v20 }
  0xd2   :  { %391 = vsyncpa [#allocation3], 1 }

// kernel: _lambda_.5
= control target key start
LH: loop header
LB: loop body
LE: loop exit
PB: predicated region body
PF: predicated region fallthrough
CT: control target
= control target key end

     0   :  { %10 = vsyncpa [#allocation3], 0  ;;  %s971_s0 = inlined_call_operand.vmem [shape: bf16[2,16,16], index: 0, kind: input, shape index: {}]   ;;  %s972_s1 = inlined_call_operand.vmem [shape: bf16[2,8,8], index: 1, kind: input, shape index: {}]   ;;  %s973_s2 = inlined_call_operand.vmem [shape: bf16[2,8,8], index: 2, kind: input, shape index: {}]   ;;  %s974_s3 = inlined_call_operand.vmem [shape: bf16[16,8], index: 3, kind: input, shape index: {}]   ;;  %s975_s4 = inlined_call_operand.vmem [shape: bf16[8,16], index: 4, kind: input, shape index: {}]   ;;  %s976_s5 = inlined_call_operand.hbm [shape: f32[2,3,16,16], index: 5, kind: output, shape index: {}]  }
   0x1   :  { %12 = vsyncpa [#allocation3 + $0x1], 0  ;;  %s836_s18 = smov 0   ;;  %s838_s19 = smov 0  }
   0x2   :  { %s840_s20 = smov 0   ;;  %s842_s21 = smov 0  }
   0x3   :  { %s844_s22 = smov 0   ;;  %s846_s23 = smov 0  }
   0x4 LB: > { %s631_s24 = sadd.s32 4294967295, %s802_s23   ;;  %s632_s25 = sadd.s32 4294967294, %s802_s23   ;;  %s802_s23 = sphi %s846_s23, %s18_s23   ;;  %s798_s22 = sphi %s844_s22, %s983_s22   ;;  %s794_s21 = sphi %s842_s21, %s982_s21   ;;  %s790_s20 = sphi %s840_s20, %s981_s20   ;;  %s786_s19 = sphi %s838_s19, %s980_s19   ;;  %s782_s18 = sphi %s836_s18, %s979_s18  }
   0x5   : > { %s37_s26 = sadd.s32 1, %s798_s22  ;;  %s180_s27 = sadd.s32 1, %s790_s20 }
   0x6   : > { %p39_p0 = scmp.ge.s32.totalorder %s37_s26, 2  ;;  %p190_p1 = scmp.ne.s32.totalorder %s790_s20, %s786_s19 }
   0x7   : > { %p191_p2 = scmp.eq.s32.totalorder %s631_s24, 1  ;;  %p196_p3 = scmp.ne.s32.totalorder %s786_s19, %s782_s18 }
   0x8   : > { %s985_s26 = smov (%p39_p0, %s37_s26), 0  ;;  %p197_p5 = scmp.eq.s32.totalorder %s632_s25, 1 }
   0x9   : > { %p876_p4 = por %p191_p2, %p190_p1  ;;  %s173_s29 = ssub.s32 %s798_s22, %s985_s26 }
   0xa   : > { %p635_p6 = scmp.ge.s32.totalorder %s802_s23, 1  ;;  %p178_p7 = scmp.eq.s32.totalorder %s173_s29, 0 }
   0xb   : > { %p883_p8 = por %p197_p5, %p196_p3  ;;  %p263_p9 = scmp.lt.s32.totalorder %s802_s23, 3 }
   0xc   : > { %s889_s6 = scalar_select %p178_p7, %s790_s20, %s180_s27  }
   0xd   : > { %p264_p10 = pnand %p635_p6, %p263_p9 }
   0xe   : > { %p319_p11 = scmp.lt.s32.totalorder (!%p264_p10), %s794_s21, 1  ;;  %s315_s8 = sand.u32 (!%p264_p10), 1, %s786_s19  }
   0xf   : > { %267 = sbr.rel (%p264_p10) target bundleno = 320 (0x140), region = 40  ;;  %s744_s29 = scalar_lea.hbm (!%p264_p10), %s976_s5, 96 }
  0x10   : > { %s666_s11 = smul.u32 (!%p264_p10), 48, %s794_s21 }
  0x12   : > { %s505_s14 = scalar_lea.hbm (!%p264_p10), %s976_s5, %s666_s11 }
  0x13   : > { %s508_s15 = sshll.u32 (!%p264_p10), %s505_s14, 4  ;;  %s509_s15 = int_to_ptr.hbm [resolvable:$true] %s508_s15 }
  0x14   : > { %v359_v0 = vld [vmem:[%s975_s4] sm:$0xf]  ;;  %vm365_vm0 = vcmask 1043456   ;;  %s320_s9 = scalar_select %p319_p11, %s794_s21, 1  ;;  %vm361_vm1 = vcmask 64512   ;;  %vm469_vm2 = vcmask 130048  }
  0x15   : > { %v367_v1 = vsel %vm365_vm0, %v359_v0, 0  ;;  %v660_v7 = vld [vmem:[%s974_s3] sm:$0xff]  ;;  %s738_s17 = sshra.s32 %s509_s15, 4  ;;  %s739_s17 = int_to_ptr.hbm [resolvable:$true] %s738_s17 }
  0x16   : > { %421 = vmatpush.bf16.msra.mxu2 %v367_v1  ;;  %376 = vmatpush.bf16.msra.mxu0 %v367_v1  ;;  %s638_s10 = sshll.u32 %s320_s9, 2  ;;  %s659_s25 = sshll.u32 %s320_s9, 3 }
  0x17   : > { %s350_s13 = scalar_lea.vmem %s973_s2, %s638_s10  ;;  %s340_s16 = scalar_lea.vmem %s972_s1, %s638_s10 }
  0x18   : > { %v410_v2 = vld [vmem:[%s350_s13] sm:$0xf]  ;;  %s329_s7 = scalar_lea.vmem %s971_s0, %s659_s25  ;;  %s665_s10 = smul.u32 48, %s315_s8 }
  0x19   : > { %648 = vmatmul.msk.bf16.vlgmr.msra.gmra.mxu2 %vm361_vm1, %v410_v2  ;;  %v360_v3 = vld [vmem:[%s340_s16] sm:$0xf]  ;;  %s491_s16 = scalar_lea.sflag [#allocation3], %s315_s8  ;;  %s740_s24 = scalar_lea.hbm %s739_s17, 48 }
  0x1a   : > { %640 = vmatmul.msk.bf16.vlgmr.msra.gmra.mxu0 %vm361_vm1, %v360_v3  ;;  %v662_v13 = vld [vmem:[%s329_s7] sm:$0xff]   ;;  %s918_s9 = scalar_lea.vmem [#allocation2], %s665_s10  ;;  %p741_p12 = scmp.ne.s32.totalorder %s739_s17, %s740_s24 }
  0x1b   : > { %v663_v15 = vunpack.c.l.bf16 %v662_v13  ;;  %v664_v23 = vunpack.c.h.bf16 %v662_v13  ;;  %s506_s21 = sshll.u32 %s918_s9, 4  ;;  %p745_p1 = scmp.lt.s32.totalorder %s739_s17, %s976_s5  ;;  %s507_s21 = int_to_ptr.vmem [resolvable:$true] %s506_s21 }
  0x1c   : > { %p742_p13 = pnand %p741_p12, %p876_p4  ;;  %p746_p2 = scmp.lt.s32.totalorder %s744_s29, %s740_s24 }
  0x1e   : > { %p743_p0 = pneg %p742_p13  ;;  %p747_p3 = por %p746_p2, %p745_p1 }
  0x20   : > { %p748_p5 = pnand %p747_p3, %p743_p0 }
  0x97   : > { %v378_v4 = vpop.f32.mrf.mxu0 }
  0x98   : > { %v382_v5 = vpack.c.bf16 %v378_v4, %v378_v4 }
  0x9a   : > { %v392_v6 = vsel %vm365_vm0, %v382_v5, 0 }
  0x9b   : > { %401 = vmatpush.bf16.msra.mxu1 %v392_v6 }
  0x9c   : > { %v423_v8 = vpop.f32.mrf.mxu2 }
  0x9d   : > { %v427_v9 = vpack.c.bf16 %v423_v8, %v423_v8 }
  0x9e   : > { %645 = vmatmul.msk.bf16.vlgmr.msra.gmra.mxu1 %vm361_vm1, %v660_v7 }
  0x9f   : > { %v380_v10 = vpop.f32.mrf.mxu0  ;;  %v429_v11 = vsel %vm365_vm0, %v427_v9, 0 }
  0xa0   : > { %438 = vmatpush.bf16.msra.mxu3 %v429_v11 }
  0xa3   : > { %649 = vmatmul.msk.bf16.vlgmr.msra.gmra.mxu3 %vm361_vm1, %v660_v7 }
  0xa4   : > { %v425_v12 = vpop.f32.mrf.mxu2 }
 0x11b   : > { %v403_v14 = vpop.f32.mrf.mxu1 }
 0x11c   : > { %v646_v16 = vadd.f32 -128.0, %v403_v14 }
 0x11e   : > { %v459_v17 = vmul.f32 1.772, %v646_v16  ;;  %v451_v20 = vmul.f32 0.344136, %v646_v16 }
 0x120   : > { %v461_v18 = vadd.f32 %v663_v15, %v459_v17  ;;  %v453_v28 = vsub.f32 %v663_v15, %v451_v20 }
 0x122   : > { %v481_v19 = vmax.f32 %v461_v18, 0.0 }
 0x123   : > { %v405_v21 = vpop.f32.mrf.mxu1 }
 0x124   : > { %v483_v22 = vmin.f32 %v481_v19, 255.0  ;;  %v647_v24 = vadd.f32 -128.0, %v405_v21 }
 0x126   : > { %v485_v25 = vmul.f32 0.003921569, %v483_v22  ;;  %v460_v26 = vmul.f32 1.772, %v647_v24  ;;  %v440_v27 = vpop.f32.mrf.mxu3  ;;  %v452_v39 = vmul.f32 0.344136, %v647_v24 }
 0x127   : > { %v650_v29 = vadd.f32 -128.0, %v440_v27 }
 0x128   : > { %654 = vst.msk [vmem:[%s918_s9 + $0x20] sm:$0xff] %vm469_vm2, %v485_v25  ;;  %v462_v30 = vadd.f32 %v664_v23, %v460_v26  ;;  %v454_v48 = vsub.f32 %v664_v23, %v452_v39 }
 0x129   : > { %v447_v31 = vmul.f32 1.402, %v650_v29  ;;  %v455_v32 = vmul.f32 0.714136, %v650_v29 }
 0x12a   : > { %v482_v33 = vmax.f32 %v462_v30, 0.0 }
 0x12b   : > { %v449_v34 = vadd.f32 %v663_v15, %v447_v31  ;;  %v457_v35 = vsub.f32 %v453_v28, %v455_v32 }
 0x12c   : > { %v484_v36 = vmin.f32 %v482_v33, 255.0 }
 0x12d   : > { %v463_v37 = vmax.f32 %v449_v34, 0.0  ;;  %v472_v38 = vmax.f32 %v457_v35, 0.0 }
 0x12e   : > { %v486_v40 = vmul.f32 0.003921569, %v484_v36  ;;  %v442_v41 = vpop.f32.mrf.mxu3 }
 0x12f   : > { %v465_v42 = vmin.f32 %v463_v37, 255.0  ;;  %v474_v43 = vmin.f32 %v472_v38, 255.0  ;;  %v651_v44 = vadd.f32 -128.0, %v442_v41 }
 0x130   : > { %655 = vst.msk [vmem:[%s918_s9 + $0x28] sm:$0xff] %vm469_vm2, %v486_v40 }
 0x131   : > { %v467_v45 = vmul.f32 0.003921569, %v465_v42  ;;  %v476_v46 = vmul.f32 0.003921569, %v474_v43  ;;  %v448_v47 = vmul.f32 1.402, %v651_v44 }
 0x132   : > { %v456_v49 = vmul.f32 0.714136, %v651_v44 }
 0x133   : > { %470 = vst.msk [vmem:[%s918_s9] sm:$0xff] %vm469_vm2, %v467_v45  ;;  %v450_v50 = vadd.f32 %v664_v23, %v448_v47 }
 0x134   : > { %652 = vst.msk [vmem:[%s918_s9 + $0x10] sm:$0xff] %vm469_vm2, %v476_v46  ;;  %v458_v51 = vsub.f32 %v454_v48, %v456_v49 }
 0x135   : > { %v464_v52 = vmax.f32 %v450_v50, 0.0 }
 0x136   : > { %v473_v53 = vmax.f32 %v458_v51, 0.0 }
 0x137   : > { %v466_v54 = vmin.f32 %v464_v52, 255.0 }
 0x138   : > { %v475_v55 = vmin.f32 %v473_v53, 255.0 }
 0x139   : > { %v468_v56 = vmul.f32 0.003921569, %v466_v54 }
 0x13a   : > { %v477_v57 = vmul.f32 0.003921569, %v475_v55 }
 0x13b   : > { %471 = vst.msk [vmem:[%s918_s9 + $0x8] sm:$0xff] %vm469_vm2, %v468_v56 }
 0x13c   : > { %653 = vst.msk [vmem:[%s918_s9 + $0x18] sm:$0xff] %vm469_vm2, %v477_v57 }
 0x13d   : > { %751 = shalt.err (!%p748_p5)
}
 0x13e   : > { %s804_s8 = smov 128   ;;  %s805_s9 = smov 8  }
 0x13f   : > { %667 = dma.vmem_to_hbm [thread:$0]  (%p876_p4), %s507_s21, 768, %s509_s15, %s491_s16, %s804_s8, %s804_s8, %s805_s9  }
 0x140 PF: > { %p673_p6 = scmp.ge.s32.totalorder %s802_s23, 2  ;;  %s523_s11 = sand.u32 1, %s782_s18  }
 0x141   : > { %s524_s12 = scalar_lea.sflag [#allocation3], %s523_s11 }
 0x142   : > { %p670_p7 = pnand %p673_p6, %p883_p8 }
 0x144   : > { %p671_p9 = pneg %p670_p7 }
 0x146   : > { %777 = dma.done.wait (%p671_p9), %s524_s12, 768  }
 0x147   : > { %779 = vsyncadd (%p671_p9), %s524_s12, 4294966528  ;;  %s18_s23 = sadd.s32 1, %s802_s23   ;;  %s979_s18 = smov %s786_s19 }
 0x148   : > { %p15_p10 = scmp.ge.s32.totalorder %s18_s23, 4   ;;  %s980_s19 = smov %s790_s20 }
 0x149   : > { %s981_s20 = smov %s889_s6  ;;  %s982_s21 = smov %s798_s22 }
 0x14a   : > { %s983_s22 = smov %s985_s26  ;;  %17 = sbr.rel (!%p15_p10) target bundleno = 4 (0x4), region = 83 }
 0x14f   :  { %530 = vsyncpa [#allocation3], 1 }
 0x150   :  { %532 = vsyncpa [#allocation3 + $0x1], 1 }

</bundles_post_ra>
